<compile_context>
chip_gen: v6e
topology: v6e:2x2x1
jax: 0.10.0
libtpu: 0.0.40
codegen_flags: <defaults>
</compile_context>

<pallas_src>
import functools

import jax
import jax.numpy as jnp
from jax.experimental import pallas as pl
from jax.experimental.pallas import tpu as pltpu


def _round_up(x, m):
    return ((x + m - 1) // m) * m


def _sublane_multiple(dtype):
    # Sub-32-bit dtypes pack along sublanes: 8 rows for 4B, 16 for 2B, 32 for 1B.
    return {4: 8, 2: 16, 1: 32}.get(jnp.dtype(dtype).itemsize, 8)


def _compute_dtype(dtype):
    # Keep bf16 elementwise math native (v6e/v7x VPU); everything else in f32.
    if jnp.dtype(dtype) == jnp.dtype(jnp.bfloat16):
        return jnp.bfloat16
    return jnp.float32


# --------------------------------------------------------------------------
# Single-pass path: a block holds TR whole rows (TR x H*W).
# --------------------------------------------------------------------------
def _fused_kernel(x_ref, a_ref, b_ref, o_ref, *, inv_hw, tr, compute_dtype):
    # x_ref/o_ref: (TR, HW).  a_ref/b_ref: (R_ab, 1), resident across the grid.
    start = pl.program_id(0) * tr
    if tr % 8 == 0:  # static (trace-time) hint for the sublane slice
        start = pl.multiple_of(start, 8)

    x = x_ref[...]
    # Per-row mean; accumulate in f32 regardless of input dtype.
    mean = jnp.sum(x, axis=-1, keepdims=True, dtype=jnp.float32) * inv_hw   # (TR, 1)

    a = a_ref[pl.ds(start, tr), :].astype(jnp.float32)                      # (TR, 1)
    b = b_ref[pl.ds(start, tr), :].astype(jnp.float32)
    c = (b - a * mean).astype(compute_dtype)        # cheap column ops
    a_c = a.astype(compute_dtype)

    xc = x.astype(compute_dtype)                    # no-op for f32 and bf16 inputs
    # a*(x-mean)*x + b*x  ==  x * (a*x + (b - a*mean))
    o_ref[...] = (xc * (a_c * xc + c)).astype(o_ref.dtype)


# --------------------------------------------------------------------------
# Two-pass path for very large H*W: pass 1 = per-row sums over pixel chunks.
# --------------------------------------------------------------------------
def _row_sum_kernel(x_ref, s_ref, *, hw, tc, mask_tail):
    c = pl.program_id(1)
    x = x_ref[...]
    if mask_tail:
        # Tail pixel chunk may overhang H*W: zero the out-of-range lanes so the
        # sum stays exact (divide by the true H*W later).
        col = c * tc + jax.lax.broadcasted_iota(jnp.int32, x_ref.shape, 1)
        x = jnp.where(col < hw, x, jnp.zeros_like(x))

    @pl.when(c == 0)
    def _():
        s_ref[...] = jnp.zeros_like(s_ref)

    s_ref[...] += jnp.sum(x, axis=-1, keepdims=True, dtype=jnp.float32)


# Pass 2 = elementwise apply with precomputed per-row coefficients.
def _apply_kernel(x_ref, a_ref, c_ref, o_ref, *, compute_dtype):
    x = x_ref[...].astype(compute_dtype)
    a = a_ref[...].astype(compute_dtype)
    c = c_ref[...].astype(compute_dtype)
    o_ref[...] = (x * (a * x + c)).astype(o_ref.dtype)


# --------------------------------------------------------------------------
# Wrapper
# --------------------------------------------------------------------------
def local_attention(x, a, b, *, target_block_bytes=8 << 20):
    """LocalAttention forward.  x: (N, C, H, W);  a, b: (C, 1, 1)."""
    N, C, H, W = x.shape
    HW = H * W
    R = N * C
    itemsize = jnp.dtype(x.dtype).itemsize
    m = _sublane_multiple(x.dtype)
    cdt = _compute_dtype(x.dtype)
    inv_hw = 1.0 / float(HW)

    # Row-major flatten: row index = n*C + c.  No padding of x, ever.
    x_rows = x.reshape(R, HW)
    a_rows = jnp.tile(a.reshape(C, 1).astype(jnp.float32), (N, 1))   # (R, 1)
    b_rows = jnp.tile(b.reshape(C, 1).astype(jnp.float32), (N, 1))

    hw_lanes = _round_up(HW, 128)          # physical lanes one row occupies in VMEM
    bytes_per_row = hw_lanes * itemsize
    min_rows = min(m, R)

    if min_rows * bytes_per_row <= target_block_bytes:
        # ---------------- single-pass: whole rows per block ----------------
        if R <= m:
            tr = R                                       # full-extent sublane dim
        else:
            rows_budget = max(m, (target_block_bytes // bytes_per_row) // m * m)
            tr = min(rows_budget, (R // m) * m)
        num_blocks = (R + tr - 1) // tr
        # v7x megacore: make sure the parallel axis has >= 2 blocks when possible.
        if num_blocks == 1 and R >= 2 * m:
            tr = _round_up((R + 1) // 2, m)
            num_blocks = (R + tr - 1) // tr

        # Resident per-row coefficients: pad the tiny (R,1) arrays (not x!) so
        # every in-kernel row slice is in bounds.
        r_ab = num_blocks * tr
        if r_ab != R:
            a_rows = jnp.pad(a_rows, ((0, r_ab - R), (0, 0)))
            b_rows = jnp.pad(b_rows, ((0, r_ab - R), (0, 0)))

        # Derive the VMEM limit from the actual footprint:
        #   double-buffered x in + out  +  resident a/b  +  margin.
        x_blk = _round_up(tr, 8) * hw_lanes * itemsize
        ab_bytes = 2 * _round_up(r_ab, 8) * 128 * 4
        vmem_limit = int(min(64 << 20, max(32 << 20, 4 * x_blk + 2 * ab_bytes + (2 << 20))))

        kernel = functools.partial(_fused_kernel, inv_hw=inv_hw, tr=tr,
                                   compute_dtype=cdt)
        out = pl.pallas_call(
            kernel,
            out_shape=jax.ShapeDtypeStruct((R, HW), x.dtype),
            grid_spec=pltpu.PrefetchScalarGridSpec(
                num_scalar_prefetch=0,
                grid=(num_blocks,),
                in_specs=[
                    pl.BlockSpec((tr, HW), lambda r: (r, 0)),     # x rows, full HW
                    pl.BlockSpec((r_ab, 1), lambda r: (0, 0)),    # a, resident
                    pl.BlockSpec((r_ab, 1), lambda r: (0, 0)),    # b, resident
                ],
                out_specs=pl.BlockSpec((tr, HW), lambda r: (r, 0)),
            ),
            compiler_params=pltpu.CompilerParams(
                dimension_semantics=("parallel",),
                vmem_limit_bytes=vmem_limit,
            ),
        )(x_rows, a_rows, b_rows)
        return out.reshape(N, C, H, W)

    # ---------------- two-pass: tile the pixel axis for large H*W ----------------
    tr = min(m, R)
    tc = max(128, (target_block_bytes // max(1, tr * itemsize)) // 128 * 128)
    num_r = (R + tr - 1) // tr
    num_c = (HW + tc - 1) // tc
    mask_tail = (HW % tc) != 0

    x_blk = _round_up(tr, 8) * tc * itemsize

    # Pass 1: per-row sums, accumulated across pixel chunks (pixel axis is the
    # reduction axis and comes last / "arbitrary").
    vmem1 = int(min(64 << 20, max(32 << 20, 2 * x_blk + (2 << 20))))
    sums = pl.pallas_call(
        functools.partial(_row_sum_kernel, hw=HW, tc=tc, mask_tail=mask_tail),
        out_shape=jax.ShapeDtypeStruct((R, 1), jnp.float32),
        grid_spec=pltpu.PrefetchScalarGridSpec(
            num_scalar_prefetch=0,
            grid=(num_r, num_c),
            in_specs=[pl.BlockSpec((tr, tc), lambda r, c: (r, c))],
            out_specs=pl.BlockSpec((tr, 1), lambda r, c: (r, 0)),
        ),
        compiler_params=pltpu.CompilerParams(
            dimension_semantics=("parallel", "arbitrary"),
            vmem_limit_bytes=vmem1,
        ),
    )(x_rows)

    mean = sums * inv_hw                 # (R, 1) f32, tiny
    c_rows = b_rows - a_rows * mean      # (R, 1): b - a*mean per row

    # Pass 2: fully parallel elementwise apply.
    vmem2 = int(min(64 << 20, max(32 << 20, 4 * x_blk + (4 << 20))))
    out = pl.pallas_call(
        functools.partial(_apply_kernel, compute_dtype=cdt),
        out_shape=jax.ShapeDtypeStruct((R, HW), x.dtype),
        grid_spec=pltpu.PrefetchScalarGridSpec(
            num_scalar_prefetch=0,
            grid=(num_r, num_c),
            in_specs=[
                pl.BlockSpec((tr, tc), lambda r, c: (r, c)),
                pl.BlockSpec((tr, 1), lambda r, c: (r, 0)),
                pl.BlockSpec((tr, 1), lambda r, c: (r, 0)),
            ],
            out_specs=pl.BlockSpec((tr, tc), lambda r, c: (r, c)),
        ),
        compiler_params=pltpu.CompilerParams(
            dimension_semantics=("parallel", "parallel"),
            vmem_limit_bytes=vmem2,
        ),
    )(x_rows, a_rows, c_rows)
    return out.reshape(N, C, H, W)


def local_attention_ref(x, a, b):
    xf = x.astype(jnp.float32)
    mean = jnp.mean(xf, axis=(2, 3), keepdims=True)
    return a[None, ...] * (xf - mean) * xf + b[None, ...] * xf


def _check(name, x, a, b, atol, rtol, **kw):
    y = jax.block_until_ready(local_attention(x, a, b, **kw))
    y_ref = local_attention_ref(x, a, b)
    assert y.shape == x.shape, f"{name}: shape {y.shape} != {x.shape}"
    assert y.dtype == x.dtype, f"{name}: dtype {y.dtype} != {x.dtype}"
    ok = jnp.allclose(y.astype(jnp.float32), y_ref, atol=atol, rtol=rtol)
    assert bool(ok), f"{name}: mismatch vs reference"


if __name__ == "__main__":
    key = jax.random.PRNGKey(0)
    k1, k2 = jax.random.split(key)

    # Deterministic parameter init matching nn.Module.__init__ (a=zeros, b=ones),
    # perturbed so the a*(x-mean)*x term is exercised.
    N, C, H, W = 2, 4, 16, 16
    x = jax.random.normal(k1, (N, C, H, W), dtype=jnp.float32)
    a = jnp.zeros((C, 1, 1), jnp.float32) + 0.1 * jnp.arange(C, dtype=jnp.float32).reshape(C, 1, 1)
    b = jnp.ones((C, 1, 1), jnp.float32) + 0.05 * jnp.arange(C, dtype=jnp.float32).reshape(C, 1, 1)

    # 1) Main single-pass path (f32).
    _check("fused_f32", x, a, b, atol=1e-5, rtol=1e-5)

    # 2) Pixel-tiled two-pass path (force a tiny block budget at small shapes).
    _check("two_pass_f32", x, a, b, atol=1e-5, rtol=1e-5, target_block_bytes=4096)

    # 3) Ragged rows (R % 8 != 0) and H*W not a multiple of 128 — no padding copies.
    C2 = 3
    x2 = jax.random.normal(k2, (3, C2, 10, 10), dtype=jnp.float32)
    a2 = 0.2 * jnp.arange(1, C2 + 1, dtype=jnp.float32).reshape(C2, 1, 1)
    b2 = jnp.ones((C2, 1, 1), jnp.float32)
    _check("ragged_f32", x2, a2, b2, atol=1e-5, rtol=1e-5)

    # 4) bf16 input: elementwise math stays in bf16, mean accumulated in f32.
    _check("fused_bf16", x.astype(jnp.bfloat16), a, b, atol=5e-2, rtol=5e-2)

    print("KERNEL_OK")
</pallas_src>

<mosaic_0001>
module attributes {stable_mosaic.version = 11 : i64} {
  func.func @_fused_kernel(%arg0: i32, %arg1: memref<8x256xf32, #tpu.memory_space<vmem>>, %arg2: memref<8x1xf32, #tpu.memory_space<vmem>>, %arg3: memref<8x1xf32, #tpu.memory_space<vmem>>, %arg4: memref<8x256xf32, #tpu.memory_space<vmem>>) attributes {dimension_semantics = [#tpu.dimension_semantics<parallel>], iteration_bounds = array<i64: 1>, scalar_prefetch = 0 : i64, scratch_operands = 0 : i64, tpu.core_type = #tpu.core_type<tc>, window_params = [{transform_indices = @transform_0, window_bounds = array<i64: 8, 256>}, {pipeline_mode = #tpu.pipeline_mode<synchronous>, transform_indices = @transform_1, window_bounds = array<i64: 8, 1>}, {pipeline_mode = #tpu.pipeline_mode<synchronous>, transform_indices = @transform_2, window_bounds = array<i64: 8, 1>}, {transform_indices = @transform_3, window_bounds = array<i64: 8, 256>}]} {
    %c8_i32 = arith.constant 8 : i32
    %0 = arith.muli %arg0, %c8_i32 : i32
    %1 = tpu.assume_multiple %0, 8 : i32
    %c0 = arith.constant 0 : index
    %c0_0 = arith.constant 0 : index
    %2 = vector.load %arg1[%c0, %c0_0] : memref<8x256xf32, #tpu.memory_space<vmem>>, vector<8x256xf32>
    %cst = arith.constant dense<0.000000e+00> : vector<8xf32>
    %3 = vector.multi_reduction <add>, %2, %cst [1] : vector<8x256xf32> to vector<8xf32>
    %4 = vector.shape_cast %3 : vector<8xf32> to vector<8x1xf32>
    %cst_1 = arith.constant 3.906250e-03 : f32
    %5 = vector.broadcast %cst_1 : f32 to vector<8x1xf32>
    %6 = arith.mulf %4, %5 : vector<8x1xf32>
    %7 = arith.index_cast %1 : i32 to index
    %c0_2 = arith.constant 0 : index
    %8 = vector.load %arg2[%7, %c0_2] : memref<8x1xf32, #tpu.memory_space<vmem>>, vector<8x1xf32>
    %9 = arith.index_cast %1 : i32 to index
    %c0_3 = arith.constant 0 : index
    %10 = vector.load %arg3[%9, %c0_3] : memref<8x1xf32, #tpu.memory_space<vmem>>, vector<8x1xf32>
    %11 = arith.mulf %8, %6 : vector<8x1xf32>
    %12 = arith.subf %10, %11 : vector<8x1xf32>
    %13 = vector.broadcast %8 : vector<8x1xf32> to vector<8x256xf32>
    %14 = arith.mulf %13, %2 : vector<8x256xf32>
    %15 = vector.broadcast %12 : vector<8x1xf32> to vector<8x256xf32>
    %16 = arith.addf %14, %15 : vector<8x256xf32>
    %17 = arith.mulf %2, %16 : vector<8x256xf32>
    %c0_4 = arith.constant 0 : index
    %c0_5 = arith.constant 0 : index
    %18 = vector.load %arg4[%c0_4, %c0_5] : memref<8x256xf32, #tpu.memory_space<vmem>>, vector<8x256xf32>
    tpu.vector_store %arg4[%c0_4, %c0_5], %17 {strides = array<i32>} : memref<8x256xf32, #tpu.memory_space<vmem>>, vector<8x256xf32>,
    return
  }
  func.func @transform_0(%arg0: i32) -> (i32, i32) {
    %c0_i32 = arith.constant 0 : i32
    %c0_i32_0 = arith.constant 0 : i32
    return %arg0, %c0_i32 : i32, i32
  }
  func.func @transform_1(%arg0: i32) -> (i32, i32) {
    %c0_i32 = arith.constant 0 : i32
    %c0_i32_0 = arith.constant 0 : i32
    %c0_i32_1 = arith.constant 0 : i32
    return %c0_i32, %c0_i32_0 : i32, i32
  }
  func.func @transform_2(%arg0: i32) -> (i32, i32) {
    %c0_i32 = arith.constant 0 : i32
    %c0_i32_0 = arith.constant 0 : i32
    %c0_i32_1 = arith.constant 0 : i32
    return %c0_i32, %c0_i32_0 : i32, i32
  }
  func.func @transform_3(%arg0: i32) -> (i32, i32) {
    %c0_i32 = arith.constant 0 : i32
    %c0_i32_0 = arith.constant 0 : i32
    return %arg0, %c0_i32 : i32, i32
  }
}

</mosaic_0001>

<bundles_post_ra>
// kernel: tpu_custom_call.1
= control target key start
LH: loop header
LB: loop body
LE: loop exit
PB: predicated region body
PF: predicated region fallthrough
CT: control target
= control target key end

     0   :  { %s123_s0 = inlined_call_operand.vmem [shape: f32[8,256], index: 0, kind: input, shape index: {}]   ;;  %s124_s1 = inlined_call_operand.vmem [shape: f32[8,1], index: 1, kind: input, shape index: {}]   ;;  %s125_s2 = inlined_call_operand.vmem [shape: f32[8,1], index: 2, kind: input, shape index: {}]   ;;  %s126_s3 = inlined_call_operand.hbm [shape: f32[8,256], index: 3, kind: output, shape index: {}]  }
   0x1   :  { %v16_v0 = vld [vmem:[%s123_s0] sm:$0xff]  ;;  %v17_v1 = vld [vmem:[%s123_s0 + $0x8] sm:$0xff] }
   0x2   :  { %8 = vsyncpa [#allocation3], 0  ;;  %v18_v2 = vadd.f32 %v17_v1, %v16_v0  ;;  %v86_v3 = vmov 0   ;;  %v23_v4 = vld [vmem:[%s124_s1] sm:$0xff]  ;;  %s87_s0 = smov [#allocation2]  }
   0x3   :  { %62 = vset.pattern.permute.xlu0 %v86_v3  ;;  %63 = vset.pattern.permute.xlu1 %v86_v3  ;;  %v25_v7 = vld [vmem:[%s125_s2] sm:$0xff]  ;;  %s52_s20 = sshll.u32 %s87_s0, 4  ;;  %s53_s20 = int_to_ptr.vmem [resolvable:$true] %s52_s20 }
   0x4   :  { %19 = vadd.xlane.f32.xlu0 %v18_v2  ;;  %s64_s1 = scalar_lea.vmem %s53_s20, 256  ;;  %p69_p1 = scmp.lt.s32.totalorder %s53_s20, %s53_s20 }
   0x5   :  { %p65_p0 = scmp.ne.s32.totalorder %s53_s20, %s64_s1  ;;  %p70_p2 = scmp.lt.s32.totalorder %s64_s1, %s64_s1 }
   0x7   :  { %p71_p3 = por %p70_p2, %p69_p1 }
   0x9   :  { %p72_p4 = pnand %p71_p3, %p65_p0 }
  0x1a   :  { %30 = vperm.xlu0 %62, %v23_v4  }
  0x8d   :  { %v20_v5 = vpop.xlane.xlu0 %19 }
  0x8e   :  { %v21_v6 = vmul.f32 0.00390625, %v20_v5 }
  0x90   :  { %v26_v8 = vmul.f32 %v23_v4, %v21_v6 }
  0x92   :  { %v27_v9 = vsub.f32 %v25_v7, %v26_v8 }
  0x94   :  { %37 = vperm.xlu1 %63, %v27_v9  }
  0x95   :  { %v31_v10 = vpop.permute.xlu0 %30 }
  0x96   :  { %v33_v11 = vmul.f32 %v31_v10, %v16_v0  ;;  %v34_v12 = vmul.f32 %v31_v10, %v17_v1 }
 0x10f   :  { %v38_v13 = vpop.permute.xlu1 %37 }
 0x110   :  { %v40_v14 = vadd.f32 %v38_v13, %v33_v11  ;;  %v41_v15 = vadd.f32 %v38_v13, %v34_v12 }
 0x112   :  { %v42_v16 = vmul.f32 %v40_v14, %v16_v0  ;;  %v43_v17 = vmul.f32 %v41_v15, %v17_v1 }
 0x114   :  { %44 = vst [vmem:[#allocation2] sm:$0xff] %v42_v16  ;;  %45 = vst [vmem:[#allocation2 + $0x8] sm:$0xff] %v43_v17 }
 0x115   :  { %75 = shalt.err (!%p72_p4)
}
 0x116   :  { %55 = dma.vmem_to_hbm [thread:$0]  %s53_s20, 256, %s126_s3, [#allocation3]  }
 0x117   :  { %84 = dma.done.wait [#allocation3], 256  }
 0x118   :  { %85 = vsyncadd [#allocation3], 4294967040 }
 0x119   :  { %59 = vsyncpa [#allocation3], 1 }

</bundles_post_ra>
